<compile_context>
chip_gen: v7x
topology: tpu7x:2x2x1
jax: 0.10.0
libtpu: 0.0.40
codegen_flags: <defaults>
</compile_context>

<pallas_src>
import jax
import jax.numpy as jnp
from jax.experimental import pallas as pl
from jax.experimental.pallas import tpu as pltpu


def _round_up(x: int, m: int) -> int:
    return ((x + m - 1) // m) * m


def _embed_kernel(labels_ref, table_ref, out_ref):
    # labels_ref: (n_pad, 1) int32, VMEM-resident (constant index_map).
    # table_ref : (vocab, cond_pad), VMEM-resident (constant index_map).
    # out_ref   : (tile_n, cond_pad) output tile for this grid step.
    tile_n = out_ref.shape[0]
    vocab = table_ref.shape[0]

    start = pl.multiple_of(pl.program_id(0) * tile_n, 8)
    labels = labels_ref[pl.ds(start, tile_n), :]                 # (tile_n, 1)

    # One-hot gather: VPU compare (hidden under MXU/DMA), then one MXU matmul.
    # Out-of-range labels produce an all-zero one-hot row (no OOB read).
    col_ids = jax.lax.broadcasted_iota(jnp.int32, (tile_n, vocab), 1)
    one_hot = (labels == col_ids).astype(table_ref.dtype)        # (tile_n, vocab)

    out_ref[...] = jnp.dot(
        one_hot, table_ref[...], preferred_element_type=jnp.float32
    ).astype(out_ref.dtype)


def label_embedder_forward(labels, embedding_table, *, tile_n=2048):
    """Equivalent of nn.Embedding(num_classes + 1, cond_size)(labels)."""
    orig_shape = labels.shape
    vocab, cond_size = embedding_table.shape
    dt = embedding_table.dtype
    dt_size = jnp.dtype(dt).itemsize

    flat = labels.reshape(-1).astype(jnp.int32)
    n = flat.shape[0]

    # Lane-dense output: pad embedding width to a multiple of 128 only if needed.
    cond_pad = _round_up(cond_size, 128)
    table = embedding_table
    if cond_pad != cond_size:
        table = jnp.pad(embedding_table, ((0, 0), (0, cond_pad - cond_size)))

    # Tile size: big tiles amortize per-step overhead; keep >= 2 grid steps when
    # there is enough work so "parallel" can shard across v7x's two TCs.
    n8 = max(8, _round_up(n, 8))
    two_step_cap = _round_up(pl.cdiv(n8, 2), 8)
    tile_n = max(8, min(tile_n, two_step_cap, n8))

    n_pad = _round_up(n, tile_n)
    flat = jnp.pad(flat, (0, n_pad - n))
    labels_2d = flat.reshape(n_pad, 1)

    grid = (n_pad // tile_n,)

    # Explicit scoped-VMEM budget (resident labels + resident table +
    # double-buffered output + one-hot temp + f32 accumulator + headroom).
    vmem_bytes = (
        n_pad * 4
        + vocab * cond_pad * dt_size
        + 2 * tile_n * cond_pad * dt_size
        + tile_n * _round_up(vocab, 128) * 4
        + tile_n * cond_pad * 4
        + (2 << 20)
    )
    vmem_limit = int(min(max(vmem_bytes, 16 << 20), 64 << 20))

    out = pl.pallas_call(
        _embed_kernel,
        out_shape=jax.ShapeDtypeStruct((n_pad, cond_pad), dt),
        grid_spec=pl.GridSpec(
            grid=grid,
            in_specs=[
                # Whole label array, constant block index -> VMEM-resident.
                pl.BlockSpec((n_pad, 1), lambda i: (0, 0)),
                # Whole table at its true shape, constant block index -> resident.
                pl.BlockSpec((vocab, cond_pad), lambda i: (0, 0)),
            ],
            out_specs=pl.BlockSpec((tile_n, cond_pad), lambda i: (i, 0)),
        ),
        compiler_params=pltpu.CompilerParams(
            dimension_semantics=("parallel",),
            vmem_limit_bytes=vmem_limit,
        ),
    )(labels_2d, table)

    return out[:n, :cond_size].reshape(*orig_shape, cond_size)


if __name__ == "__main__":
    # Module config (small, consistent with LabelEmbedder.__init__):
    num_classes = 16
    cond_size = 128  # lane-dense embedding width

    key = jax.random.PRNGKey(0)
    k_table, k_labels = jax.random.split(key)

    # nn.Embedding default init: weights ~ N(0, 1); table has num_classes + 1
    # rows (extra row for the classifier-free-guidance "null" label).
    embedding_table = jax.random.normal(
        k_table, (num_classes + 1, cond_size), dtype=jnp.float32
    )

    # Labels: (batch=2, seq=8), values in [0, num_classes] inclusive.
    labels = jax.random.randint(
        k_labels, (2, 8), minval=0, maxval=num_classes + 1, dtype=jnp.int32
    )

    out = label_embedder_forward(labels, embedding_table)
    out = jax.block_until_ready(out)

    # Reference check (plain JAX gather).
    ref = embedding_table[labels]
    assert out.shape == (2, 8, cond_size), out.shape
    assert jnp.allclose(out, ref), "Pallas embedding lookup mismatch"

    print("KERNEL_OK")
</pallas_src>

<mosaic_0001>
module attributes {stable_mosaic.version = 11 : i64} {
  func.func @_embed_kernel(%arg0: i32, %arg1: memref<16x1xi32, #tpu.memory_space<vmem>>, %arg2: memref<17x128xf32, #tpu.memory_space<vmem>>, %arg3: memref<8x128xf32, #tpu.memory_space<vmem>>) attributes {dimension_semantics = [#tpu.dimension_semantics<parallel>], iteration_bounds = array<i64: 2>, scalar_prefetch = 0 : i64, scratch_operands = 0 : i64, tpu.core_type = #tpu.core_type<tc>, window_params = [{pipeline_mode = #tpu.pipeline_mode<synchronous>, transform_indices = @transform_0, window_bounds = array<i64: 16, 1>}, {pipeline_mode = #tpu.pipeline_mode<synchronous>, transform_indices = @transform_1, window_bounds = array<i64: 17, 128>}, {transform_indices = @transform_2, window_bounds = array<i64: 8, 128>}]} {
    %c8_i32 = arith.constant 8 : i32
    %0 = arith.muli %arg0, %c8_i32 : i32
    %1 = tpu.assume_multiple %0, 8 : i32
    %2 = arith.index_cast %1 : i32 to index
    %c0 = arith.constant 0 : index
    %3 = vector.load %arg1[%2, %c0] : memref<16x1xi32, #tpu.memory_space<vmem>>, vector<8x1xi32>
    %4 = tpu.iota {dimensions = array<i32: 1>} : vector<8x17xi32>
    %5 = vector.broadcast %3 : vector<8x1xi32> to vector<8x17xi32>
    %6 = arith.cmpi eq, %5, %4 : vector<8x17xi32>
    %7 = arith.extui %6 : vector<8x17xi1> to vector<8x17xi32>
    %8 = arith.sitofp %7 : vector<8x17xi32> to vector<8x17xf32>
    %c0_0 = arith.constant 0 : index
    %c0_1 = arith.constant 0 : index
    %9 = vector.load %arg2[%c0_0, %c0_1] : memref<17x128xf32, #tpu.memory_space<vmem>>, vector<17x128xf32>
    %cst = arith.constant dense<0.000000e+00> : vector<8x128xf32>
    %10 = tpu.matmul %8, %9, %cst {dimension_numbers = #tpu.dot_dimension_numbers<[1], [0], [0], [1], [0, 0, 1, 1], [], []>} : vector<8x17xf32>, vector<17x128xf32>, vector<8x128xf32> -> vector<8x128xf32>
    %c0_2 = arith.constant 0 : index
    %c0_3 = arith.constant 0 : index
    %11 = vector.load %arg3[%c0_2, %c0_3] : memref<8x128xf32, #tpu.memory_space<vmem>>, vector<8x128xf32>
    tpu.vector_store %arg3[%c0_2, %c0_3], %10 {strides = array<i32>} : memref<8x128xf32, #tpu.memory_space<vmem>>, vector<8x128xf32>,
    return
  }
  func.func @transform_0(%arg0: i32) -> (i32, i32) {
    %c0_i32 = arith.constant 0 : i32
    %c0_i32_0 = arith.constant 0 : i32
    %c0_i32_1 = arith.constant 0 : i32
    return %c0_i32, %c0_i32_0 : i32, i32
  }
  func.func @transform_1(%arg0: i32) -> (i32, i32) {
    %c0_i32 = arith.constant 0 : i32
    %c0_i32_0 = arith.constant 0 : i32
    %c0_i32_1 = arith.constant 0 : i32
    return %c0_i32, %c0_i32_0 : i32, i32
  }
  func.func @transform_2(%arg0: i32) -> (i32, i32) {
    %c0_i32 = arith.constant 0 : i32
    %c0_i32_0 = arith.constant 0 : i32
    return %arg0, %c0_i32 : i32, i32
  }
}

</mosaic_0001>

<bundles_post_ra>
// kernel: tpu_custom_call.1
= control target key start
LH: loop header
LB: loop body
LE: loop exit
PB: predicated region body
PF: predicated region fallthrough
CT: control target
= control target key end

     0   :  { %7 = vsyncpa [#allocation3], 0  ;;  %s645_s0 = inlined_call_operand.vmem [shape: s32[16,1], index: 0, kind: input, shape index: {}]   ;;  %s646_s1 = inlined_call_operand.hbm [shape: f32[17,128], index: 1, kind: input, shape index: {}]   ;;  %s647_s2 = inlined_call_operand.hbm [shape: f32[16,128], index: 2, kind: output, shape index: {}]  }
   0x1   :  { %8 = vsyncpa [#allocation4], 0 }
   0x2   :  { %10 = vsyncpa [#allocation4 + $0x1], 0  ;;  %s511_s9 = smov 0   ;;  %s513_s10 = smov 0  }
   0x3   :  { %s515_s11 = smov 0   ;;  %s517_s12 = smov 0  }
   0x4 LB: > { %s532_s13 = sadd.s32 4294967295, %s486_s12   ;;  %s305_s14 = sadd.s32 4294967294, %s486_s12   ;;  %s486_s12 = sphi %s517_s12, %s663_s12   ;;  %s482_s11 = sphi %s515_s11, %s662_s11   ;;  %s478_s10 = sphi %s513_s10, %s661_s10   ;;  %s474_s9 = sphi %s511_s9, %s660_s9  }
   0x5   : > { %s536_s15 = sadd.s32 1, %s486_s12   ;;  %s65_s16 = sadd.s32 1, %s482_s11 }
   0x6   : > { %s62_s17 = ssub.s32 %s486_s12, %s536_s15  ;;  %p75_p0 = scmp.ne.s32.totalorder %s482_s11, %s478_s10 }
   0x7   : > { %p63_p1 = scmp.eq.s32.totalorder %s62_s17, 0  ;;  %p76_p2 = scmp.eq.s32.totalorder %s532_s13, 1 }
   0x8   : > { %p81_p3 = scmp.ne.s32.totalorder %s478_s10, %s474_s9  ;;  %p82_p4 = scmp.eq.s32.totalorder %s305_s14, 1 }
   0x9   : > { %s547_s18 = scalar_select %p63_p1, %s482_s11, %s65_s16  }
   0xa   : > { %p549_p5 = por %p76_p2, %p75_p0  ;;  %p553_p6 = por %p82_p4, %p81_p3 }
   0xb   : > { %p306_p7 = scmp.ge.s32.totalorder %s486_s12, 1  ;;  %p89_p8 = scmp.lt.s32.totalorder %s486_s12, 3 }
   0xc   : > { %s651_s19 = scalar_select %p549_p5, 1, 0 }
   0xd   : > { %s652_s20 = scalar_select %p553_p6, 1, 0 }
   0xe   : > { %p648_p9 = scmp.eq.s32.totalorder %s532_s13, 0  ;;  %p560_p10 = pnand %p306_p7, %p89_p8 }
   0xf   : > { %s488_s22 = smov [#allocation2]   ;;  %s392_s27 = scalar_lea.hbm %s646_s1, 384 }
  0x10   : > { %s653_s21 = scalar_select %p560_p10, 1, 0 }
  0x11   : > { %s104_s23 = sshll.u32 %s488_s22, 4  ;;  %p341_p11 = pneg %p560_p10  ;;  %s105_s23 = int_to_ptr.vmem [resolvable:$true] %s104_s23 }
  0x12   : > { %p393_p13 = scmp.ne.s32.totalorder %s646_s1, %s392_s27  ;;  %p399_p3 = scmp.lt.u32.totalorder %s392_s27, %s646_s1 }
  0x13   : > { %p568_p12 = pnand %p648_p9, %p341_p11 }
  0x15   : > { %p394_p0 = pneg %p568_p12 }
  0x17   : > { %p395_p1 = pnand %p394_p0, %p393_p13 }
  0x19   : > { %p396_p2 = pneg %p395_p1 }
  0x1b   : > { %p401_p4 = pnand %p399_p3, %p396_p2 }
  0x1d   : > { %404 = shalt.err (!%p401_p4)
}
  0x1e   : > { %s405_s4 = scalar_lea.vmem %s105_s23, 384  ;;  %p413_p9 = scmp.lt.s32.totalorder %s105_s23, %s105_s23 }
  0x1f   : > { %p406_p7 = scmp.ne.s32.totalorder %s105_s23, %s405_s4  ;;  %p414_p6 = scmp.lt.s32.totalorder %s405_s4, %s405_s4 }
  0x21   : > { %p408_p8 = pnand %p406_p7, %p394_p0  ;;  %p415_p5 = por %p414_p6, %p413_p9 }
  0x23   : > { %p409_p11 = pneg %p408_p8 }
  0x25   : > { %p416_p10 = pnand %p415_p5, %p409_p11 }
  0x27   : > { %419 = shalt.err (!%p416_p10)
}
  0x28   : > { %s489_s5 = smov 128   ;;  %s490_s6 = smov 8  }
  0x29   : > { %344 = dma.hbm_to_vmem [thread:$0]  (!%p568_p12), %s646_s1, 384, %s105_s23, [#allocation3], %s489_s5, %s489_s5, %s490_s6  }
  0x2a   : > { %p655_p13 = scmp.ne.s32.totalorder %s653_s21, 0 }
  0x2b   : > { %p656_p1 = scmp.eq.s32.totalorder (!%p655_p13), %s532_s13, 0 }
  0x2c   : > { %120 = sbr.rel (%p655_p13) target bundleno = 411 (0x19b), region = 28 }
  0x33   : > { %465 = dma.done.wait (%p656_p1), [#allocation3], 384   ;;  %p657_p0 = pmov %p656_p1 }
  0x34   : > { %v491_v0 = vmov 0   ;;  %s311_s14 = sshll.u32 %s532_s13, 3  ;;  %v492_v1 = vmov 0.0|0.0   ;;  %v148_v3 = vld [vmem:[#allocation2] sm:$0xff]  ;;  %v149_v4 = vld [vmem:[#allocation2 + $0x8] sm:$0xff]  ;;  %vm493_vm0 = vmmov 0   ;;  %v140_v8 = vlaneseq }
  0x35   : > { %467 = vsyncadd (%p657_p0), [#allocation3], 4294966912  ;;  %391 = vset.pattern.permute.xlu0 %v491_v0  ;;  %332 = vmatprep.subr.bf16.mxu0 %v492_v1  ;;  %s138_s22 = scalar_lea.vmem %s645_s0, %s311_s14  ;;  %v333_v5 = vpack.c.bf16 %v149_v4, %v148_v3  ;;  %v494_v6 = vmov 0.0   ;;  %v150_v7 = vld [vmem:[#allocation2 + $0x10] sm:$0x1]  ;;  %vm155_vm1 = vcmask 1040384  }
  0x36   : > { %v139_v2 = vld [vmem:[%s138_s22] sm:$0xff]  ;;  %329 = vmatprep.mubr.msk.f32.mxu0 %vm493_vm0, %v494_v6  ;;  %v141_v9 = vand.u32 127, %v140_v8  ;;  %vm151_vm2 = vcmask 138240   ;;  %s134_s21 = sand.u32 1, %s478_s10   ;;  %s316_s26 = sshll.u32 %s532_s13, 7 }
  0x37   : > { %143 = vperm.xlu0 %391, %v139_v2   ;;  %334 = vmatpush3.bf16.msra.mxu0 %v333_v5  ;;  %s310_s23 = sshll.u32 %s134_s21, 3  ;;  %s605_s29 = scalar_lea.hbm %s647_s2, %s316_s26 }
  0x38   : > { %327 = vmatprep.subr.mxu0 %v494_v6  ;;  %s136_s24 = scalar_lea.vmem [#allocation5], %s310_s23  ;;  %s231_s30 = scalar_lea.sflag [#allocation4], %s134_s21 }
  0x39   : > { %s244_s25 = sshll.u32 %s136_s24, 4  ;;  %p658_p6 = scmp.ne.s32.totalorder %s651_s19, 0  ;;  %s600_s25 = int_to_ptr.vmem [resolvable:$true] %s244_s25 }
  0x3a   : > { %s420_s3 = scalar_lea.vmem %s600_s25, 128  ;;  %s495_s13 = smov [#allocation5]  }
  0x3b   : > { %328 = vmatpush3.msk.msra.mxu0 %vm155_vm1, %v150_v7  ;;  %p421_p5 = scmp.ne.s32.totalorder %s600_s25, %s420_s3  ;;  %s424_s4 = sshll.u32 %s495_s13, 4  ;;  %s425_s4 = int_to_ptr.vmem [resolvable:$false] %s424_s4 }
  0x3c   : > { %s426_s5 = scalar_lea.vmem %s425_s4, 256  ;;  %p427_p12 = scmp.lt.s32.totalorder %s600_s25, %s425_s4 }
  0x3d   : > { %p422_p9 = pnand %p421_p5, %p658_p6  ;;  %p428_p2 = scmp.lt.s32.totalorder %s426_s5, %s420_s3 }
  0x3f   : > { %p423_p10 = pneg %p422_p9  ;;  %p429_p3 = por %p428_p2, %p427_p12 }
  0x41   : > { %p430_p4 = pnand %p429_p3, %p423_p10 }
  0xb6   : > { %v144_v10 = vpop.permute.xlu0 %143 }
  0xb7   : > { %vm145_vm3 = vcmp.eq.s32.totalorder %v144_v10, %v141_v9 }
  0xb8   : > { %v312_v11 = vsel %vm145_vm3, 1.0, %v494_v6 }
  0xb9   : > { %330 = vmatmul.mubr.msk.f32.vlgmr.msra.gmra.mrb[0].mxu0 %vm151_vm2, %v312_v11 }
 0x18c   : > { %v225_v12 = vpop.f32.mrb[0].mxu0 }
 0x18d   : > { %229 = vst [vmem:[%s136_s24] sm:$0xff] %v225_v12  ;;  %v331_v13 = vpop.f32.mrb[1].mxu0 }
 0x18e   : > { %433 = shalt.err (!%p430_p4)
}
 0x18f   : > { %s434_s6 = scalar_lea.hbm %s605_s29, 128  ;;  %s438_s14 = scalar_lea.hbm %s647_s2, 256 }
 0x190   : > { %p435_p7 = scmp.ne.s32.totalorder %s605_s29, %s434_s6  ;;  %p439_p13 = scmp.lt.u32.totalorder %s605_s29, %s647_s2 }
 0x191   : > { %p440_p1 = scmp.lt.u32.totalorder %s438_s14, %s434_s6  ;;  %p442_p5 = scmp.lt.u32.totalorder %s434_s6, %s605_s29 }
 0x192   : > { %p436_p8 = pnand %p435_p7, %p658_p6 }
 0x193   : > { %p441_p0 = por %p440_p1, %p439_p13 }
 0x194   : > { %p437_p11 = pneg %p436_p8 }
 0x195   : > { %p443_p9 = por %p442_p5, %p441_p0 }
 0x197   : > { %p444_p10 = pnand %p443_p9, %p437_p11 }
 0x199   : > { %447 = shalt.err (!%p444_p10)
}
 0x19a   : > { %339 = dma.vmem_to_hbm [thread:$0]  (%p658_p6), %s600_s25, 128, %s605_s29, %s231_s30  }
 0x19b PF: > { %p351_p12 = scmp.ge.s32.totalorder %s486_s12, 2  ;;  %s256_s22 = sand.u32 1, %s474_s9  }
 0x19c   : > { %p659_p2 = scmp.ne.s32.totalorder %s652_s20, 0  ;;  %s257_s21 = scalar_lea.sflag [#allocation4], %s256_s22 }
 0x19e   : > { %p346_p3 = pnand %p351_p12, %p659_p2 }
 0x1a0   : > { %469 = dma.done.wait (!%p346_p3), %s257_s21, 128  }
 0x1a1   : > { %471 = vsyncadd (!%p346_p3), %s257_s21, 4294967168  ;;  %p13_p4 = scmp.ge.s32.totalorder %s536_s15, 4   ;;  %s660_s9 = smov %s478_s10 }
 0x1a2   : > { %s661_s10 = smov %s482_s11  ;;  %s662_s11 = smov %s547_s18 }
 0x1a3   : > { %s663_s12 = smov %s536_s15  ;;  %15 = sbr.rel (!%p13_p4) target bundleno = 4 (0x4), region = 66 }
 0x1aa   :  { %262 = vsyncpa [#allocation3], 1 }
 0x1ab   :  { %264 = vsyncpa [#allocation3 + $0x1], 1 }
 0x1ac   :  { %265 = vsyncpa [#allocation4], 1 }
 0x1ad   :  { %267 = vsyncpa [#allocation4 + $0x1], 1 }

</bundles_post_ra>
